<compile_context>
chip_gen: v5e
topology: v5e:2x2
jax: 0.10.0
libtpu: 0.0.40
codegen_flags: <defaults>
</compile_context>

<pallas_src>
import functools

import jax
import jax.numpy as jnp
from jax.experimental import pallas as pl
from jax.experimental.pallas import tpu as pltpu


# ------------------------------ helpers -------------------------------------

def _round_up(x: int, m: int) -> int:
    return -(-x // m) * m


def _vmem_limit_bytes(default: int = 48 * 1024 * 1024) -> int:
    """Generation-aware VMEM limit (≈3/4 of physical), safe fallback 48 MiB."""
    try:
        cap = int(pltpu.get_tpu_info().vmem_capacity_bytes)
        return max(32 * 1024 * 1024, min(cap * 3 // 4, 112 * 1024 * 1024))
    except Exception:
        return default


def _pick_tk(fin: int) -> int:
    for cand in (512, 256, 128):
        if fin % cand == 0:
            return cand
    return fin  # single K block (lane dim == full dim is legal)


def _pick_tn(fout: int, head_dim: int, split_heads: bool, max_tn: int) -> int:
    """Largest divisor of fout that is <= max_tn, a multiple of 128 and (when
    splitting heads in-kernel) a multiple of head_dim."""
    if fout <= max_tn:
        return fout
    for d in range(2, fout + 1):
        if fout % d:
            continue
        tn = fout // d
        if tn > max_tn:
            continue
        if split_heads and tn % head_dim:
            continue
        if tn % 128:
            continue
        return tn
    return fout  # fallback: rely on vmem_limit headroom


def _choose_tiles(s_pad, fin, fout, head_dim, split_heads,
                  x_bytes, out_bytes, budget):
    """Pick (ts, tk, tn).  Prefer a fully VMEM-resident weight (single K/N
    block, no accumulator); otherwise K/N-tile with ts large enough to beat
    the weight-streaming break-even (~310-650 rows per the review)."""
    w_bytes = 2  # bf16 weight
    min_tn = min(head_dim if split_heads else 128, fout)
    for ts_cand in (512, 384, 256, 128, 64, 32, 16, 8):
        ts = min(ts_cand, _round_up(s_pad, 8))
        # (a) resident weight: 2x x-block + 2x weight + 2x out-block
        use = (2 * ts * fin * x_bytes + 2 * fin * fout * w_bytes
               + 2 * ts * fout * out_bytes)
        if use <= budget:
            return ts, fin, fout
        # (b) K/N tiled with an f32 accumulator
        tk = _pick_tk(fin)
        fixed = 2 * ts * tk * x_bytes
        per_tn = 2 * tk * w_bytes + 2 * ts * out_bytes + ts * 4
        max_tn = (budget - fixed) // per_tn if budget > fixed else 0
        if max_tn >= min_tn:
            tn = _pick_tn(fout, head_dim, split_heads, max_tn)
            if tn <= max_tn:
                return ts, tk, tn
    return 8, _pick_tk(fin), _pick_tn(fout, head_dim, split_heads, min_tn)


def prepare_projection_weight(weight: jax.Array, nheads: int,
                              dtype=jnp.bfloat16) -> jax.Array:
    """One-time (outside jit) weight prep.

    PyTorch Linear weight is (fout, fin); the module's head split is the
    *interleaved* one: out[b*h + head, s, d] = x[b,s,:] @ weight[d*nheads+head,:].
    We reorder rows to head-major (head*head_dim + d) and transpose to
    (fin, fout) so the kernel's output columns are already head-contiguous.
    """
    fout, fin = weight.shape
    assert fout % nheads == 0
    head_dim = fout // nheads
    w_hm = jnp.transpose(weight.reshape(head_dim, nheads, fin), (1, 0, 2))
    return w_hm.reshape(fout, fin).T.astype(dtype)   # (fin, fout), head-major


# ----------------------------- Pallas kernel --------------------------------

def _proj_kernel(x_ref, w_ref, o_ref, *scratch, nheads_per_blk: int,
                 head_dim: int, seq_len: int, ts: int,
                 split_heads: bool, needs_mask: bool):
    # grid axes: (b, s, n, k).  All program_id reads hoisted to the top so no
    # program_id primitive ends up inside a pl.when (cond) branch.
    s_idx = pl.program_id(1)
    k_idx = pl.program_id(3)
    num_k = pl.num_programs(3)

    # In-kernel activation cast: x streamed once in native dtype, bf16 on MXU.
    x = x_ref[0].astype(jnp.bfloat16)                     # (ts, tk)
    part = jnp.dot(x, w_ref[...], preferred_element_type=jnp.float32)

    if scratch:                      # K is tiled -> accumulate in f32 VMEM
        acc_ref = scratch[0]

        @pl.when(k_idx == 0)
        def _init():
            acc_ref[...] = jnp.zeros_like(acc_ref)

        acc_ref[...] += part

    def _emit(masked: bool):
        if masked:
            rows = (jax.lax.broadcasted_iota(jnp.int32, (ts, 1), 0)
                    + s_idx * ts)
            keep = rows < seq_len                          # (ts, 1) broadcast

        def col(j0: int, width: int):
            # slice straight from the scratch ref (no full-acc materialization)
            v = (scratch[0][:, j0:j0 + width] if scratch
                 else part[:, j0:j0 + width])
            if masked:
                v = jnp.where(keep, v, 0.0)
            return v.astype(o_ref.dtype)

        if split_heads:
            # head_dim is a multiple of 128 -> lane-dense per-head stores.
            for h in range(nheads_per_blk):
                o_ref[h, :, :] = col(h * head_dim, head_dim)
        else:
            # lane-dense (ts, tn) store; head split happens in the wrapper.
            o_ref[0, :, :] = col(0, o_ref.shape[-1])

    is_last_k = k_idx == num_k - 1
    if needs_mask:
        # only seq tiles that actually contain padding rows pay masking cost
        tile_has_pad = (s_idx + 1) * ts > seq_len

        @pl.when(jnp.logical_and(is_last_k, tile_has_pad))
        def _flush_masked():
            _emit(True)

        @pl.when(jnp.logical_and(is_last_k, jnp.logical_not(tile_has_pad)))
        def _flush_plain():
            _emit(False)
    else:
        @pl.when(is_last_k)
        def _flush():
            _emit(False)


# --------------------------- ProjectionLayer forward ------------------------

@functools.partial(jax.jit, static_argnames=("nheads", "block_len",
                                             "out_dtype", "tile_overrides"))
def projection_layer_forward(x, w_hm, *, nheads: int, block_len: int = 0,
                             out_dtype=jnp.bfloat16, tile_overrides=None):
    """ProjectionLayer forward (identity=False, bias=False).

    x     : (B, S, fin)        activations (native dtype; cast in-kernel)
    w_hm  : (fin, fout) bf16   prepared via prepare_projection_weight()
    returns (B*nheads, S, head_dim)            if block_len == 0
            (B*nheads, NB, BL, head_dim)       if block_len  > 0
    """
    B, S, fin = x.shape
    fin_w, fout = w_hm.shape
    assert fin == fin_w and fout % nheads == 0
    head_dim = fout // nheads
    split_heads = (head_dim % 128 == 0)           # lane-dense per-head stores

    s_pad = _round_up(S, block_len) if block_len > 0 else S
    needs_mask = s_pad > S

    x_bytes = x.dtype.itemsize
    out_bytes = jnp.dtype(out_dtype).itemsize
    vmem_limit = _vmem_limit_bytes()

    if tile_overrides is not None:
        ts, tk, tn = tile_overrides
    else:
        ts, tk, tn = _choose_tiles(s_pad, fin, fout, head_dim, split_heads,
                                   x_bytes, out_bytes,
                                   budget=int(vmem_limit * 0.8))
    assert ts % 8 == 0
    assert fin % tk == 0, "reduction tile must divide fin"
    assert fout % tn == 0, "fout tile must divide fout"
    if split_heads:
        assert tn % head_dim == 0

    n_s = pl.cdiv(s_pad, ts)
    n_n = fout // tn
    n_k = fin // tk
    grid = (B, n_s, n_n, n_k)
    resident_w = (n_n == 1 and n_k == 1)          # single block, DMA'd once

    hpb = (tn // head_dim) if split_heads else 1
    kernel = functools.partial(
        _proj_kernel, nheads_per_blk=hpb, head_dim=head_dim, seq_len=S,
        ts=ts, split_heads=split_heads, needs_mask=needs_mask)

    if split_heads:
        # fused head split: columns already head-major -> direct slab writes
        out_shape = jax.ShapeDtypeStruct((B * nheads, s_pad, head_dim),
                                         out_dtype)
        out_spec = pl.BlockSpec((hpb, ts, head_dim),
                                lambda b, s, n, k: (b * n_n + n, s, 0))
    else:
        # lane-dense kernel output; cheap head-split transpose in the wrapper
        out_shape = jax.ShapeDtypeStruct((B, s_pad, fout), out_dtype)
        out_spec = pl.BlockSpec((1, ts, tn), lambda b, s, n, k: (b, s, n))

    scratch = [] if n_k == 1 else [pltpu.VMEM((ts, tn), jnp.float32)]

    w_stream = (fin * fout * 2 if resident_w
                else B * int(n_s) * fin * fout * 2)
    cost = pl.CostEstimate(
        flops=2 * B * s_pad * fin * fout,
        transcendentals=0,
        bytes_accessed=(B * S * fin * x_bytes + w_stream
                        + B * s_pad * fout * out_bytes))

    out = pl.pallas_call(
        kernel,
        out_shape=out_shape,
        grid_spec=pltpu.PrefetchScalarGridSpec(
            num_scalar_prefetch=0,
            grid=grid,
            in_specs=[
                pl.BlockSpec((1, ts, tk), lambda b, s, n, k: (b, s, k)),
                pl.BlockSpec((tk, tn), lambda b, s, n, k: (k, n)),
            ],
            out_specs=out_spec,
            scratch_shapes=scratch,
        ),
        compiler_params=pltpu.CompilerParams(
            dimension_semantics=("parallel", "parallel", "parallel",
                                 "arbitrary"),
            vmem_limit_bytes=vmem_limit,
        ),
        cost_estimate=cost,
    )(x, w_hm)

    if not split_heads:
        # head-major columns -> (B, nheads, s_pad, head_dim) -> flatten heads
        out = out.reshape(B, s_pad, nheads, head_dim).transpose(0, 2, 1, 3)
        out = out.reshape(B * nheads, s_pad, head_dim)

    if block_len > 0:
        # contiguous reshape only — zero padding already happened in-kernel
        out = out.reshape(B * nheads, s_pad // block_len, block_len, head_dim)
    return out


# ------------------------------ reference -----------------------------------

def reference_forward(x, weight, nheads: int, block_len: int):
    """Plain-JAX mirror of the PyTorch module (bf16 matmul, f32 accum)."""
    B, S, fin = x.shape
    fout = weight.shape[0]
    head_dim = fout // nheads
    y = jnp.dot(x.astype(jnp.bfloat16).reshape(B * S, fin),
                weight.astype(jnp.bfloat16).T,
                preferred_element_type=jnp.float32).reshape(B, S, fout)
    out = jnp.transpose(y.reshape(B, S, head_dim, nheads), (0, 3, 1, 2))
    out = out.reshape(B * nheads, S, head_dim)
    if block_len > 0:
        nb = -(-S // block_len)
        pad = nb * block_len - S
        if pad > 0:
            out = jnp.pad(out, ((0, 0), (0, pad), (0, 0)))
        out = out.reshape(B * nheads, nb, block_len, head_dim)
    return out


# --------------------------------- main --------------------------------------

if __name__ == "__main__":
    key = jax.random.PRNGKey(0)
    k1, k2, k3, k4 = jax.random.split(key, 4)

    # ---- Config 1: head_dim < 128 (lane-dense output path), resident weight,
    #      S not a multiple of block_len (fused zero-pad mask exercised) ------
    B, S, fin, fout, nheads, block_len = 2, 60, 128, 128, 4, 16
    head_dim = fout // nheads
    nb = -(-S // block_len)

    x = jax.random.normal(k1, (B, S, fin), dtype=jnp.float32)
    bound = 1.0 / (fin ** 0.5)
    weight = jax.random.uniform(k2, (fout, fin), jnp.float32, -bound, bound)
    w_hm = prepare_projection_weight(weight, nheads)

    out_blocks = projection_layer_forward(x, w_hm, nheads=nheads,
                                          block_len=block_len)
    out_flat = projection_layer_forward(x, w_hm, nheads=nheads, block_len=0,
                                        out_dtype=jnp.float32)
    jax.block_until_ready((out_blocks, out_flat))

    ref_blocks = reference_forward(x, weight, nheads, block_len)
    ref_flat = reference_forward(x, weight, nheads, 0)

    assert out_blocks.shape == (B * nheads, nb, block_len, head_dim)
    assert out_flat.shape == (B * nheads, S, head_dim)
    assert jnp.allclose(out_blocks.astype(jnp.float32), ref_blocks,
                        atol=2e-2, rtol=2e-2)
    assert jnp.allclose(out_flat.astype(jnp.float32), ref_flat,
                        atol=2e-2, rtol=2e-2)

    # ---- Config 2: head_dim == 128 (fused in-kernel head split), forced
    #      K/N tiling (2 K steps w/ f32 accumulator, 2 N tiles) ---------------
    B2, S2, fin2, fout2, nheads2 = 2, 64, 256, 256, 2
    head_dim2 = fout2 // nheads2
    x2 = jax.random.normal(k3, (B2, S2, fin2), dtype=jnp.float32)
    bound2 = 1.0 / (fin2 ** 0.5)
    weight2 = jax.random.uniform(k4, (fout2, fin2), jnp.float32,
                                 -bound2, bound2)
    w2_hm = prepare_projection_weight(weight2, nheads2)

    out2 = projection_layer_forward(x2, w2_hm, nheads=nheads2, block_len=0,
                                    tile_overrides=(64, 128, 128))
    jax.block_until_ready(out2)
    ref2 = reference_forward(x2, weight2, nheads2, 0)

    assert out2.shape == (B2 * nheads2, S2, head_dim2)
    assert jnp.allclose(out2.astype(jnp.float32), ref2, atol=2e-2, rtol=2e-2)

    print("KERNEL_OK")
</pallas_src>

<mosaic_0001>
module attributes {stable_mosaic.version = 11 : i64} {
  func.func @_proj_kernel(%arg0: i32, %arg1: i32, %arg2: i32, %arg3: i32, %arg4: memref<1x64x128xf32, #tpu.memory_space<vmem>>, %arg5: memref<128x128xbf16, #tpu.memory_space<vmem>>, %arg6: memref<1x64x128xbf16, #tpu.memory_space<vmem>>) attributes {dimension_semantics = [#tpu.dimension_semantics<parallel>, #tpu.dimension_semantics<parallel>, #tpu.dimension_semantics<parallel>, #tpu.dimension_semantics<arbitrary>], iteration_bounds = array<i64: 2, 1, 1, 1>, scalar_prefetch = 0 : i64, scratch_operands = 0 : i64, tpu.core_type = #tpu.core_type<tc>, window_params = [{transform_indices = @transform_0, window_bounds = array<i64: 1, 64, 128>}, {transform_indices = @transform_1, window_bounds = array<i64: 128, 128>}, {transform_indices = @transform_2, window_bounds = array<i64: 1, 64, 128>}]} {
    %c0 = arith.constant 0 : index
    %c0_0 = arith.constant 0 : index
    %c0_1 = arith.constant 0 : index
    %0 = vector.load %arg4[%c0, %c0_0, %c0_1] : memref<1x64x128xf32, #tpu.memory_space<vmem>>, vector<1x64x128xf32>
    %1 = vector.shape_cast %0 : vector<1x64x128xf32> to vector<64x128xf32>
    %2 = arith.truncf %1 : vector<64x128xf32> to vector<64x128xbf16>
    %c0_2 = arith.constant 0 : index
    %c0_3 = arith.constant 0 : index
    %3 = vector.load %arg5[%c0_2, %c0_3] : memref<128x128xbf16, #tpu.memory_space<vmem>>, vector<128x128xbf16>
    %cst = arith.constant dense<0.000000e+00> : vector<64x128xf32>
    %4 = tpu.matmul %2, %3, %cst {dimension_numbers = #tpu.dot_dimension_numbers<[1], [0], [0], [1], [0, 0, 1, 1], [], []>} : vector<64x128xbf16>, vector<128x128xbf16>, vector<64x128xf32> -> vector<64x128xf32>
    %c0_i32 = arith.constant 0 : i32
    %5 = arith.cmpi eq, %arg3, %c0_i32 : i32
    %c1_i32 = arith.constant 1 : i32
    %6 = arith.addi %arg1, %c1_i32 : i32
    %c64_i32 = arith.constant 64 : i32
    %7 = arith.muli %6, %c64_i32 : i32
    %c60_i32 = arith.constant 60 : i32
    %8 = arith.cmpi sgt, %7, %c60_i32 : i32
    %9 = arith.andi %5, %8 : i1
    %10 = arith.extui %9 : i1 to i32
    %c0_i32_4 = arith.constant 0 : i32
    %11 = arith.cmpi ne, %10, %c0_i32_4 : i32
    scf.if %11 {
      %16 = tpu.iota {dimensions = array<i32: 0>} : vector<64x1xi32>
      %c64_i32_6 = arith.constant 64 : i32
      %17 = arith.muli %arg1, %c64_i32_6 : i32
      %18 = vector.broadcast %17 : i32 to vector<64x1xi32>
      %19 = arith.addi %16, %18 : vector<64x1xi32>
      %c60_i32_7 = arith.constant 60 : i32
      %20 = vector.broadcast %c60_i32_7 : i32 to vector<64x1xi32>
      %21 = arith.cmpi slt, %19, %20 : vector<64x1xi32>
      %cst_8 = arith.constant 0.000000e+00 : f32
      %22 = vector.shape_cast %21 : vector<64x1xi1> to vector<64x1xi1>
      %23 = vector.broadcast %22 : vector<64x1xi1> to vector<64x128xi1>
      %24 = vector.broadcast %cst_8 : f32 to vector<64x128xf32>
      %25 = arith.select %23, %4, %24 : vector<64x128xi1>, vector<64x128xf32>
      %26 = arith.truncf %25 : vector<64x128xf32> to vector<64x128xbf16>
      %c0_9 = arith.constant 0 : index
      %c0_10 = arith.constant 0 : index
      %c0_11 = arith.constant 0 : index
      %27 = vector.load %arg6[%c0_9, %c0_10, %c0_11] : memref<1x64x128xbf16, #tpu.memory_space<vmem>>, vector<1x64x128xbf16>
      %28 = vector.shape_cast %27 : vector<1x64x128xbf16> to vector<64x128xbf16>
      %29 = vector.shape_cast %26 : vector<64x128xbf16> to vector<1x64x128xbf16>
      tpu.vector_store %arg6[%c0_9, %c0_10, %c0_11], %29 {strides = array<i32>} : memref<1x64x128xbf16, #tpu.memory_space<vmem>>, vector<1x64x128xbf16>,
    } else {
    }
    %true = arith.constant true
    %12 = arith.xori %8, %true : i1
    %13 = arith.andi %5, %12 : i1
    %14 = arith.extui %13 : i1 to i32
    %c0_i32_5 = arith.constant 0 : i32
    %15 = arith.cmpi ne, %14, %c0_i32_5 : i32
    scf.if %15 {
      %16 = arith.truncf %4 : vector<64x128xf32> to vector<64x128xbf16>
      %c0_6 = arith.constant 0 : index
      %c0_7 = arith.constant 0 : index
      %c0_8 = arith.constant 0 : index
      %17 = vector.load %arg6[%c0_6, %c0_7, %c0_8] : memref<1x64x128xbf16, #tpu.memory_space<vmem>>, vector<1x64x128xbf16>
      %18 = vector.shape_cast %17 : vector<1x64x128xbf16> to vector<64x128xbf16>
      %19 = vector.shape_cast %16 : vector<64x128xbf16> to vector<1x64x128xbf16>
      tpu.vector_store %arg6[%c0_6, %c0_7, %c0_8], %19 {strides = array<i32>} : memref<1x64x128xbf16, #tpu.memory_space<vmem>>, vector<1x64x128xbf16>,
    } else {
    }
    return
  }
  func.func @transform_0(%arg0: i32, %arg1: i32, %arg2: i32, %arg3: i32) -> (i32, i32, i32) {
    %c0_i32 = arith.constant 0 : i32
    return %arg0, %arg1, %arg3 : i32, i32, i32
  }
  func.func @transform_1(%arg0: i32, %arg1: i32, %arg2: i32, %arg3: i32) -> (i32, i32) {
    %c0_i32 = arith.constant 0 : i32
    return %arg3, %arg2 : i32, i32
  }
  func.func @transform_2(%arg0: i32, %arg1: i32, %arg2: i32, %arg3: i32) -> (i32, i32, i32) {
    %c0_i32 = arith.constant 0 : i32
    return %arg0, %arg1, %arg2 : i32, i32, i32
  }
}

</mosaic_0001>

<bundles_post_ra>
// kernel: projection_layer_forward.1
= control target key start
LH: loop header
LB: loop body
LE: loop exit
PB: predicated region body
PF: predicated region fallthrough
CT: control target
= control target key end

     0   :  { %s738_s9 = smov 0   ;;  %s740_s10 = smov 0   ;;  %s803_s0 = inlined_call_operand.vmem [shape: f32[2,60,128], index: 0, kind: input, shape index: {}]   ;;  %s804_s1 = inlined_call_operand.vmem [shape: bf16[128,128], index: 1, kind: input, shape index: {}]   ;;  %s805_s2 = inlined_call_operand.vmem [shape: bf16[2,64,128], index: 2, kind: output, shape index: {}]  }
   0x1   :  { %s742_s11 = smov 0  }
   0x2 LB: > { %s38_s12 = sadd.s32 1, %s717_s10  ;;  %p579_p0 = scmp.ge.s32.totalorder %s721_s11, 1  ;;  %s721_s11 = sphi %s742_s11, %s12_s11   ;;  %s717_s10 = sphi %s740_s10, %s807_s10   ;;  %s713_s9 = sphi %s738_s9, %s806_s9  }
   0x3   : > { %p40_p1 = scmp.ge.s32.totalorder %s38_s12, 2  ;;  %p170_p2 = scmp.lt.s32.totalorder %s721_s11, 3 }
   0x5   : > { %s809_s12 = smov (%p40_p1, %s38_s12), 0  ;;  %p171_p3 = pnand %p579_p0, %p170_p2 }
   0x6   : > { %p215_p4 = scmp.lt.s32.totalorder (!%p171_p3), %s713_s9, 1 }
   0x7   : > { %174 = sbr.rel (%p171_p3) target bundleno = 189 (0xbd), region = 28 }
   0xc   : > { %v627_v0 = vld [vmem:[%s804_s1 + $0x38] sm:$0xff]  ;;  %v626_v1 = vld [vmem:[%s804_s1 + $0x30] sm:$0xff]  ;;  %v625_v2 = vld [vmem:[%s804_s1 + $0x28] sm:$0xff]  ;;  %s811_s9 = smov (!%p215_p4, %s713_s9), 1  ;;  %v362_v22 = vlaneseq }
   0xd   : > { %325 = vmatpush.bf16.msra.mxu0 %v627_v0  ;;  %651 = vmatpush.bf16.msra.mxu1 %v627_v0  ;;  %v624_v3 = vld [vmem:[%s804_s1 + $0x20] sm:$0xff]  ;;  %v623_v4 = vld [vmem:[%s804_s1 + $0x18] sm:$0xff]  ;;  %v622_v5 = vld [vmem:[%s804_s1 + $0x10] sm:$0xff]  ;;  %s618_s25 = sshll.u32 %s811_s9, 6  ;;  %s619_s5 = sshll.u32 %s811_s9, 5 }
   0xe   : > { %652 = vmatpush.bf16.msra.mxu2 %v627_v0  ;;  %653 = vmatpush.bf16.msra.mxu3 %v627_v0  ;;  %v621_v6 = vld [vmem:[%s804_s1 + $0x8] sm:$0xff]  ;;  %s225_s30 = scalar_lea.vmem %s803_s0, %s618_s25  ;;  %v620_v7 = vld [vmem:[%s804_s1] sm:$0xff]  ;;  %v363_v23 = vshrl.u32 %v362_v22, 7  ;;  %s247_s8 = scalar_lea.vmem %s805_s2, %s619_s5 }
   0xf   : > { %v249_v8 = vld [vmem:[%s225_s30] sm:$0xff]  ;;  %v250_v9 = vld [vmem:[%s225_s30 + $0x8] sm:$0xff]  ;;  %v251_v10 = vld [vmem:[%s225_s30 + $0x10] sm:$0xff] }
  0x10   : > { %v252_v11 = vld [vmem:[%s225_s30 + $0x18] sm:$0xff]  ;;  %v253_v12 = vld [vmem:[%s225_s30 + $0x20] sm:$0xff]  ;;  %v254_v13 = vld [vmem:[%s225_s30 + $0x28] sm:$0xff]  ;;  %v257_v16 = vpack.c.bf16 %v250_v9, %v249_v8  ;;  %v370_v30 = vadd.s32 56, %v363_v23 }
  0x11   : > { %326 = vmatpush.bf16.msra.mxu0 %v626_v1  ;;  %654 = vmatpush.bf16.msra.mxu1 %v626_v1  ;;  %v255_v14 = vld [vmem:[%s225_s30 + $0x30] sm:$0xff]  ;;  %v256_v15 = vld [vmem:[%s225_s30 + $0x38] sm:$0xff]  ;;  %v258_v17 = vpack.c.bf16 %v252_v11, %v251_v10  ;;  %v259_v18 = vpack.c.bf16 %v254_v13, %v253_v12 }
  0x12   : > { %655 = vmatpush.bf16.msra.mxu2 %v626_v1  ;;  %656 = vmatpush.bf16.msra.mxu3 %v626_v1  ;;  %v260_v19 = vpack.c.bf16 %v256_v15, %v255_v14  ;;  %vm388_vm0 = vcmp.lt.s32.totalorder %v370_v30, 60 }
  0x15   : > { %327 = vmatpush.bf16.msra.mxu0 %v625_v2  ;;  %657 = vmatpush.bf16.msra.mxu1 %v625_v2 }
  0x16   : > { %658 = vmatpush.bf16.msra.mxu2 %v625_v2  ;;  %659 = vmatpush.bf16.msra.mxu3 %v625_v2 }
  0x19   : > { %328 = vmatpush.bf16.msra.mxu0 %v624_v3  ;;  %660 = vmatpush.bf16.msra.mxu1 %v624_v3 }
  0x1a   : > { %661 = vmatpush.bf16.msra.mxu2 %v624_v3  ;;  %662 = vmatpush.bf16.msra.mxu3 %v624_v3 }
  0x1d   : > { %329 = vmatpush.bf16.msra.mxu0 %v623_v4  ;;  %663 = vmatpush.bf16.msra.mxu1 %v623_v4 }
  0x1e   : > { %664 = vmatpush.bf16.msra.mxu2 %v623_v4  ;;  %665 = vmatpush.bf16.msra.mxu3 %v623_v4 }
  0x21   : > { %330 = vmatpush.bf16.msra.mxu0 %v622_v5  ;;  %666 = vmatpush.bf16.msra.mxu1 %v622_v5 }
  0x22   : > { %667 = vmatpush.bf16.msra.mxu2 %v622_v5  ;;  %668 = vmatpush.bf16.msra.mxu3 %v622_v5 }
  0x25   : > { %331 = vmatpush.bf16.msra.mxu0 %v621_v6  ;;  %669 = vmatpush.bf16.msra.mxu1 %v621_v6 }
  0x26   : > { %670 = vmatpush.bf16.msra.mxu2 %v621_v6  ;;  %671 = vmatpush.bf16.msra.mxu3 %v621_v6 }
  0x29   : > { %332 = vmatpush.bf16.msra.mxu0 %v620_v7  ;;  %672 = vmatpush.bf16.msra.mxu1 %v620_v7 }
  0x2a   : > { %673 = vmatpush.bf16.msra.mxu2 %v620_v7  ;;  %674 = vmatpush.bf16.msra.mxu3 %v620_v7 }
  0x2c   : > { %333 = vmatmul.bf16.vlgmr.msra.gmra.mxu0 %v257_v16  ;;  %338 = vmatmul.bf16.vlgmr.msra.gmra.mxu1 %v258_v17 }
  0x2d   : > { %343 = vmatmul.bf16.vlgmr.msra.gmra.mxu2 %v259_v18  ;;  %348 = vmatmul.bf16.vlgmr.msra.gmra.mxu3 %v260_v19 }
  0xa9   : > { %v334_v20 = vpop.f32.mrf.mxu0  ;;  %v339_v21 = vpop.f32.mrf.mxu1 }
  0xb0   : > { %v344_v24 = vpop.f32.mrf.mxu2  ;;  %v349_v25 = vpop.f32.mrf.mxu3 }
  0xb1   : > { %v336_v26 = vpop.f32.mrf.mxu0  ;;  %v341_v27 = vpop.f32.mrf.mxu1 }
  0xb2   : > { %v631_v28 = vpack.c.bf16 %v336_v26, %v334_v20  ;;  %v636_v29 = vpack.c.bf16 %v341_v27, %v339_v21 }
  0xb4   : > { %632 = vst [vmem:[%s247_s8] sm:$0xff] %v631_v28  }
  0xb5   : > { %648 = vst [vmem:[%s247_s8 + $0x8] sm:$0xff] %v636_v29  }
  0xb8   : > { %v346_v31 = vpop.f32.mrf.mxu2  ;;  %v351_v32 = vpop.f32.mrf.mxu3 }
  0xb9   : > { %v641_v33 = vpack.c.bf16 %v346_v31, %v344_v24  ;;  %v412_v34 = vsel %vm388_vm0, %v351_v32, 0.0 }
  0xba   : > { %v646_v35 = vpack.c.bf16 %v412_v34, %v349_v25 }
  0xbb   : > { %649 = vst [vmem:[%s247_s8 + $0x10] sm:$0xff] %v641_v33  }
  0xbc   : > { %650 = vst [vmem:[%s247_s8 + $0x18] sm:$0xff] %v646_v35  }
  0xbd PF: > { %s12_s11 = sadd.s32 1, %s721_s11   ;;  %s806_s9 = smov %s717_s10 }
  0xbe   : > { %p9_p5 = scmp.ge.s32.totalorder %s12_s11, 4   ;;  %s807_s10 = smov %s809_s12 }
  0xc0   :  { %11 = sbr.rel (!%p9_p5) target bundleno = 2 (0x2), region = 69 }

</bundles_post_ra>
